<compile_context>
chip_gen: v7x
topology: tpu7x:2x2x1
jax: 0.10.0
libtpu: 0.0.40
codegen_flags: <defaults>
</compile_context>

<pallas_src>
import jax
import jax.numpy as jnp
from jax.experimental import pallas as pl
from jax.experimental.pallas import tpu as pltpu


def _identity_kernel(x_ref, o_ref):
    # Single whole-tile store: keeps the (single, on v5e) vector-store slot
    # saturated and hidden under the HBM DMAs.
    o_ref[...] = x_ref[...]


_LANE = 128            # vreg lane width
_MAX_TILE_ROWS = 8192  # 8192 rows * 128 lanes * 4 B = 4 MiB per tile;
                       # 2 inputs-bufs + 2 output-bufs ~= 16 MiB VMEM, safely
                       # inside v7x's 32 MiB default scoped limit (64 MiB phys).


def _tiled_copy_2d(x2d: jax.Array) -> jax.Array:
    rows, cols = x2d.shape
    # Full extent if it fits one tile, otherwise an 8-aligned tile so the
    # sublane constraint is satisfied; cdiv handles a ragged last block.
    tile_rows = rows if rows <= _MAX_TILE_ROWS else _MAX_TILE_ROWS
    grid = (pl.cdiv(rows, tile_rows),)
    return pl.pallas_call(
        _identity_kernel,
        out_shape=jax.ShapeDtypeStruct((rows, cols), x2d.dtype),
        grid=grid,
        in_specs=[pl.BlockSpec((tile_rows, cols), lambda i: (i, 0))],
        out_specs=pl.BlockSpec((tile_rows, cols), lambda i: (i, 0)),
        # Identity: let the output alias the input buffer; when the caller
        # donates x this removes the HBM round-trip entirely.
        input_output_aliases={0: 0},
        compiler_params=pltpu.CompilerParams(
            # Sharded across both TensorCores on v7x; neutral on v5e/v6e.
            dimension_semantics=("parallel",),
        ),
    )(x2d)


def dummy_body_forward(x: jax.Array) -> jax.Array:
    """Identity forward pass of DummyBody (feature_dim == state_dim)."""
    total = x.size
    if total == 0 or total % _LANE != 0:
        # Awkward sizes: single full-array block, still aliased.
        return pl.pallas_call(
            _identity_kernel,
            out_shape=jax.ShapeDtypeStruct(x.shape, x.dtype),
            input_output_aliases={0: 0},
        )(x)
    # Lane-dense view: (batch, 32) f32 would only use 32/128 lanes and emit
    # masked partial stores; viewing the same bytes as (-1, 128) keeps every
    # store unmasked. Pure layout plumbing — the copy is exact either way.
    x2d = x.reshape(total // _LANE, _LANE)
    y2d = _tiled_copy_2d(x2d)
    return y2d.reshape(x.shape)


if __name__ == "__main__":
    # DummyBody(state_dim) has no parameters; forward(x) == x.
    state_dim = 32
    batch = 8

    key = jax.random.PRNGKey(0)
    x = jax.random.normal(key, (batch, state_dim), dtype=jnp.float32)

    y = dummy_body_forward(x)
    jax.block_until_ready(y)

    assert y.shape == x.shape and y.dtype == x.dtype
    assert bool(jnp.array_equal(y, x))

    print("KERNEL_OK")
</pallas_src>

<mosaic_0001>
module attributes {stable_mosaic.version = 11 : i64} {
  func.func @_identity_kernel(%arg0: i32, %arg1: memref<2x128xf32, #tpu.memory_space<vmem>>, %arg2: memref<2x128xf32, #tpu.memory_space<vmem>>) attributes {dimension_semantics = [#tpu.dimension_semantics<parallel>], iteration_bounds = array<i64: 1>, scalar_prefetch = 0 : i64, scratch_operands = 0 : i64, tpu.core_type = #tpu.core_type<tc>, window_params = [{transform_indices = @transform_0, window_bounds = array<i64: 2, 128>}, {transform_indices = @transform_1, window_bounds = array<i64: 2, 128>}]} {
    %c0 = arith.constant 0 : index
    %c0_0 = arith.constant 0 : index
    %0 = vector.load %arg1[%c0, %c0_0] : memref<2x128xf32, #tpu.memory_space<vmem>>, vector<2x128xf32>
    %c0_1 = arith.constant 0 : index
    %c0_2 = arith.constant 0 : index
    %1 = vector.load %arg2[%c0_1, %c0_2] : memref<2x128xf32, #tpu.memory_space<vmem>>, vector<2x128xf32>
    tpu.vector_store %arg2[%c0_1, %c0_2], %0 {strides = array<i32>} : memref<2x128xf32, #tpu.memory_space<vmem>>, vector<2x128xf32>,
    return
  }
  func.func @transform_0(%arg0: i32) -> (i32, i32) {
    %c0_i32 = arith.constant 0 : i32
    %c0_i32_0 = arith.constant 0 : i32
    return %arg0, %c0_i32 : i32, i32
  }
  func.func @transform_1(%arg0: i32) -> (i32, i32) {
    %c0_i32 = arith.constant 0 : i32
    %c0_i32_0 = arith.constant 0 : i32
    return %arg0, %c0_i32 : i32, i32
  }
}

</mosaic_0001>

<bundles_post_ra>
// kernel: tpu_custom_call.1
= control target key start
LH: loop header
LB: loop body
LE: loop exit
PB: predicated region body
PF: predicated region fallthrough
CT: control target
= control target key end

     0   :  { %6 = vsyncpa [#allocation3], 0  ;;  %s124_s0 = inlined_call_operand.hbm [shape: f32[2,128], index: 0, kind: input, shape index: {}, may-alias: {0,1}]   ;;  %s125_s1 = inlined_call_operand.hbm [shape: f32[2,128], index: 1, kind: output, shape index: {}, may-alias: {0,1}]  }
   0x1   :  { %7 = vsyncpa [#allocation4], 0  ;;  %s88_s6 = smov [#allocation2]   ;;  %s40_s10 = scalar_lea.hbm %s124_s0, 32 }
   0x2   :  { %s14_s7 = sshll.u32 %s88_s6, 4  ;;  %p41_p0 = scmp.ne.s32.totalorder %s124_s0, %s40_s10  ;;  %s15_s7 = int_to_ptr.vmem [resolvable:$true] %s14_s7 }
   0x3   :  { %p44_p1 = scmp.lt.u32.totalorder %s40_s10, %s124_s0 }
   0x5   :  { %p46_p2 = pnand %p44_p1, %p41_p0 }
   0x7   :  { %49 = shalt.err (!%p46_p2)
}
   0x8   :  { %s50_s15 = scalar_lea.vmem %s15_s7, 32  ;;  %p55_p4 = scmp.lt.s32.totalorder %s15_s7, %s15_s7 }
   0x9   :  { %p51_p3 = scmp.ne.s32.totalorder %s15_s7, %s50_s15  ;;  %p56_p5 = scmp.lt.s32.totalorder %s50_s15, %s50_s15 }
   0xb   :  { %p57_p6 = por %p56_p5, %p55_p4 }
   0xd   :  { %p58_p7 = pnand %p57_p6, %p51_p3 }
   0xf   :  { %61 = shalt.err (!%p58_p7)
}
  0x10   :  { %17 = dma.hbm_to_vmem [thread:$0]  %s124_s0, 32, %s15_s7, [#allocation3]  }
  0x11   :  { %84 = dma.done.wait [#allocation3], 32  }
  0x12   :  { %85 = vsyncadd [#allocation3], 4294967264  ;;  %s89_s18 = smov [#allocation5]   ;;  %v21_v0 = vld [vmem:[#allocation2] sm:$0x3] }
  0x13   :  { %s29_s19 = sshll.u32 %s89_s18, 4  ;;  %22 = vst [vmem:[#allocation5] sm:$0x3] %v21_v0  ;;  %s30_s19 = int_to_ptr.vmem [resolvable:$true] %s29_s19 }
  0x14   :  { %s62_s20 = scalar_lea.vmem %s30_s19, 32  ;;  %p67_p9 = scmp.lt.s32.totalorder %s30_s19, %s30_s19 }
  0x15   :  { %p63_p8 = scmp.ne.s32.totalorder %s30_s19, %s62_s20  ;;  %p68_p10 = scmp.lt.s32.totalorder %s62_s20, %s62_s20 }
  0x17   :  { %p69_p11 = por %p68_p10, %p67_p9 }
  0x19   :  { %p70_p12 = pnand %p69_p11, %p63_p8 }
  0x1b   :  { %73 = shalt.err (!%p70_p12)
}
  0x1c   :  { %s74_s23 = scalar_lea.hbm %s125_s1, 32 }
  0x1d   :  { %p75_p13 = scmp.ne.s32.totalorder %s125_s1, %s74_s23  ;;  %p78_p0 = scmp.lt.u32.totalorder %s74_s23, %s125_s1 }
  0x1f   :  { %p80_p1 = pnand %p78_p0, %p75_p13 }
  0x21   :  { %83 = shalt.err (!%p80_p1)
}
  0x22   :  { %32 = dma.vmem_to_hbm [thread:$0]  %s30_s19, 32, %s125_s1, [#allocation4]  }
  0x23   :  { %86 = dma.done.wait [#allocation4], 32  }
  0x24   :  { %87 = vsyncadd [#allocation4], 4294967264 }
  0x25   :  { %36 = vsyncpa [#allocation3], 1 }
  0x26   :  { %37 = vsyncpa [#allocation4], 1 }

</bundles_post_ra>
